<compile_context>
chip_gen: v6e
topology: v6e:2x2x1
jax: 0.10.0
libtpu: 0.0.40
codegen_flags: <defaults>
</compile_context>

<pallas_src>
import jax
import jax.numpy as jnp
from jax.experimental import pallas as pl
from jax.experimental.pallas import tpu as pltpu


def _round_up(n, m):
    return ((n + m - 1) // m) * m


# ----------------------------------------------------------------------------
# Pallas kernel: one batch tile of the full forward pass
# ----------------------------------------------------------------------------
def netd_kernel(x_ref, g_ref, h_ref,
                w1a_ref, w1b_ref, b1_ref,
                w2_ref, b2_ref,
                w3_ref, b3_ref,
                o_ref):
    x = x_ref[...]
    g = g_ref[...]
    h = h_ref[...]

    # Eq(3) mix:  h*x + (1-h)*g  ==  g + h*(x - g)
    mixed = g + h * (x - g)

    mixed_bf = mixed.astype(jnp.bfloat16)
    g_bf = g.astype(jnp.bfloat16)

    # fc1 split over the (virtual) concat axis -> no lane-axis concatenate.
    h1 = jnp.dot(mixed_bf, w1a_ref[...], preferred_element_type=jnp.float32)
    h1 = h1 + jnp.dot(g_bf, w1b_ref[...], preferred_element_type=jnp.float32)
    h1 = jnp.maximum(h1 + b1_ref[...], 0.0)                     # ReLU

    # fc2
    h2 = jnp.dot(h1.astype(jnp.bfloat16), w2_ref[...],
                 preferred_element_type=jnp.float32) + b2_ref[...]
    h2 = jnp.maximum(h2, 0.0)                                   # ReLU

    # fc3 (output dim padded to a lane-dense multiple of 128)
    out = jnp.dot(h2.astype(jnp.bfloat16), w3_ref[...],
                  preferred_element_type=jnp.float32) + b3_ref[...]
    o_ref[...] = out.astype(o_ref.dtype)


# ----------------------------------------------------------------------------
# Wrapper: padding, weight split/cast, batch-tiled pallas_call
# ----------------------------------------------------------------------------
def netd_forward(x, m, g, h, params):
    """m is accepted to match NetD.forward's signature but unused there."""
    del m  # unused in the reference forward pass
    B, dim = x.shape
    w1, b1, w2, b2, w3, b3 = params
    hid1 = w1.shape[1]   # 256
    hid2 = w2.shape[1]   # 128

    # ---- batch tiling ----
    if B >= 512:
        TB = 512
    else:
        TB = _round_up(B, 8)
    B_pad = _round_up(B, TB)
    if B_pad != B:
        pad = ((0, B_pad - B), (0, 0))
        x = jnp.pad(x, pad)
        g = jnp.pad(g, pad)
        h = jnp.pad(h, pad)

    # ---- weights: split fc1, cast to bf16, lane-pad fc3 output ----
    w1a = w1[:dim].astype(jnp.bfloat16)          # (Dim, 256)
    w1b = w1[dim:].astype(jnp.bfloat16)          # (Dim, 256)
    w2b = w2.astype(jnp.bfloat16)                # (256, 128)

    n_pad = _round_up(dim, 128)
    w3p = jnp.pad(w3, ((0, 0), (0, n_pad - dim))).astype(jnp.bfloat16)  # (128, n_pad)
    b3p = jnp.pad(b3, ((0, 0), (0, n_pad - dim)))                       # (1, n_pad)

    grid = (pl.cdiv(B_pad, TB),)

    act_spec = lambda: pl.BlockSpec((TB, dim), lambda i: (i, 0))
    res_spec = lambda shape: pl.BlockSpec(shape, lambda i: tuple(0 for _ in shape))

    out_pad = pl.pallas_call(
        netd_kernel,
        out_shape=jax.ShapeDtypeStruct((B_pad, n_pad), jnp.float32),
        grid=grid,
        in_specs=[
            act_spec(), act_spec(), act_spec(),          # x, g, h tiles
            res_spec(w1a.shape), res_spec(w1b.shape), res_spec(b1.shape),
            res_spec(w2b.shape), res_spec(b2.shape),
            res_spec(w3p.shape), res_spec(b3p.shape),
        ],
        out_specs=pl.BlockSpec((TB, n_pad), lambda i: (i, 0)),
        compiler_params=pltpu.CompilerParams(
            dimension_semantics=("parallel",)),
    )(x, g, h, w1a, w1b, b1, w2b, b2, w3p, b3p)

    return out_pad[:B, :dim]


# ----------------------------------------------------------------------------
# Deterministic parameter init (xavier normal weights, zero biases),
# stored as (in_features, out_features) so the kernel computes x @ W + b.
# ----------------------------------------------------------------------------
def init_params(key, dim):
    def xavier_normal(k, fan_in, fan_out):
        std = (2.0 / (fan_in + fan_out)) ** 0.5
        return std * jax.random.normal(k, (fan_in, fan_out), dtype=jnp.float32)

    k1, k2, k3 = jax.random.split(key, 3)
    w1 = xavier_normal(k1, dim * 2, 256)
    w2 = xavier_normal(k2, 256, 128)
    w3 = xavier_normal(k3, 128, dim)
    b1 = jnp.zeros((1, 256), jnp.float32)
    b2 = jnp.zeros((1, 128), jnp.float32)
    b3 = jnp.zeros((1, dim), jnp.float32)
    return (w1, b1, w2, b2, w3, b3)


# Pure-JAX reference mirroring the kernel's bf16-operand / f32-accumulate math.
def netd_ref_bf16(x, m, g, h, params):
    del m
    w1, b1, w2, b2, w3, b3 = params
    dim = x.shape[1]
    mixed = g + h * (x - g)
    h1 = (jnp.dot(mixed.astype(jnp.bfloat16), w1[:dim].astype(jnp.bfloat16),
                  preferred_element_type=jnp.float32)
          + jnp.dot(g.astype(jnp.bfloat16), w1[dim:].astype(jnp.bfloat16),
                    preferred_element_type=jnp.float32))
    h1 = jnp.maximum(h1 + b1, 0.0)
    h2 = jnp.maximum(jnp.dot(h1.astype(jnp.bfloat16), w2.astype(jnp.bfloat16),
                             preferred_element_type=jnp.float32) + b2, 0.0)
    return jnp.dot(h2.astype(jnp.bfloat16), w3.astype(jnp.bfloat16),
                   preferred_element_type=jnp.float32) + b3


# Pure-f32 reference matching the PyTorch module exactly (semantic sanity).
def netd_ref_f32(x, m, g, h, params):
    del m
    w1, b1, w2, b2, w3, b3 = params
    inp = jnp.concatenate([h * x + (1.0 - h) * g, g], axis=1)
    o = jnp.maximum(inp @ w1 + b1, 0.0)
    o = jnp.maximum(o @ w2 + b2, 0.0)
    return o @ w3 + b3


if __name__ == "__main__":
    B, Dim = 8, 32

    key = jax.random.PRNGKey(0)
    kx, kg, kh, kp = jax.random.split(key, 4)

    x = jax.random.normal(kx, (B, Dim), dtype=jnp.float32)
    g = jax.random.normal(kg, (B, Dim), dtype=jnp.float32)
    # h is a hint/mask-like tensor in {0,1}; m is unused by forward
    h = (jax.random.uniform(kh, (B, Dim)) > 0.5).astype(jnp.float32)
    m = jnp.zeros((B, Dim), jnp.float32)

    params = init_params(kp, Dim)

    out = netd_forward(x, m, g, h, params)
    jax.block_until_ready(out)
    assert out.shape == (B, Dim)

    # Tight check vs a reference that mirrors the kernel's bf16/f32 math.
    ref_bf = netd_ref_bf16(x, m, g, h, params)
    assert jnp.allclose(out, ref_bf, atol=2e-3, rtol=2e-3), "mismatch vs bf16 ref"

    # Loose semantic check vs the exact f32 PyTorch-style forward.
    ref_f32 = netd_ref_f32(x, m, g, h, params)
    assert jnp.allclose(out, ref_f32, atol=5e-2, rtol=5e-2), "mismatch vs f32 ref"

    print("KERNEL_OK")
</pallas_src>

<mosaic_0001>
module attributes {stable_mosaic.version = 11 : i64} {
  func.func @netd_kernel(%arg0: i32, %arg1: memref<8x32xf32, #tpu.memory_space<vmem>>, %arg2: memref<8x32xf32, #tpu.memory_space<vmem>>, %arg3: memref<8x32xf32, #tpu.memory_space<vmem>>, %arg4: memref<32x256xbf16, #tpu.memory_space<vmem>>, %arg5: memref<32x256xbf16, #tpu.memory_space<vmem>>, %arg6: memref<1x256xf32, #tpu.memory_space<vmem>>, %arg7: memref<256x128xbf16, #tpu.memory_space<vmem>>, %arg8: memref<1x128xf32, #tpu.memory_space<vmem>>, %arg9: memref<128x128xbf16, #tpu.memory_space<vmem>>, %arg10: memref<1x128xf32, #tpu.memory_space<vmem>>, %arg11: memref<8x128xf32, #tpu.memory_space<vmem>>) attributes {dimension_semantics = [#tpu.dimension_semantics<parallel>], iteration_bounds = array<i64: 1>, scalar_prefetch = 0 : i64, scratch_operands = 0 : i64, tpu.core_type = #tpu.core_type<tc>, window_params = [{transform_indices = @transform_0, window_bounds = array<i64: 8, 32>}, {transform_indices = @transform_1, window_bounds = array<i64: 8, 32>}, {transform_indices = @transform_2, window_bounds = array<i64: 8, 32>}, {pipeline_mode = #tpu.pipeline_mode<synchronous>, transform_indices = @transform_3, window_bounds = array<i64: 32, 256>}, {pipeline_mode = #tpu.pipeline_mode<synchronous>, transform_indices = @transform_4, window_bounds = array<i64: 32, 256>}, {pipeline_mode = #tpu.pipeline_mode<synchronous>, transform_indices = @transform_5, window_bounds = array<i64: 1, 256>}, {pipeline_mode = #tpu.pipeline_mode<synchronous>, transform_indices = @transform_6, window_bounds = array<i64: 256, 128>}, {pipeline_mode = #tpu.pipeline_mode<synchronous>, transform_indices = @transform_7, window_bounds = array<i64: 1, 128>}, {pipeline_mode = #tpu.pipeline_mode<synchronous>, transform_indices = @transform_8, window_bounds = array<i64: 128, 128>}, {pipeline_mode = #tpu.pipeline_mode<synchronous>, transform_indices = @transform_9, window_bounds = array<i64: 1, 128>}, {transform_indices = @transform_10, window_bounds = array<i64: 8, 128>}]} {
    %c0 = arith.constant 0 : index
    %c0_0 = arith.constant 0 : index
    %0 = vector.load %arg1[%c0, %c0_0] : memref<8x32xf32, #tpu.memory_space<vmem>>, vector<8x32xf32>
    %c0_1 = arith.constant 0 : index
    %c0_2 = arith.constant 0 : index
    %1 = vector.load %arg2[%c0_1, %c0_2] : memref<8x32xf32, #tpu.memory_space<vmem>>, vector<8x32xf32>
    %c0_3 = arith.constant 0 : index
    %c0_4 = arith.constant 0 : index
    %2 = vector.load %arg3[%c0_3, %c0_4] : memref<8x32xf32, #tpu.memory_space<vmem>>, vector<8x32xf32>
    %3 = arith.subf %0, %1 : vector<8x32xf32>
    %4 = arith.mulf %2, %3 : vector<8x32xf32>
    %5 = arith.addf %1, %4 : vector<8x32xf32>
    %6 = arith.truncf %5 : vector<8x32xf32> to vector<8x32xbf16>
    %7 = arith.truncf %1 : vector<8x32xf32> to vector<8x32xbf16>
    %c0_5 = arith.constant 0 : index
    %c0_6 = arith.constant 0 : index
    %8 = vector.load %arg4[%c0_5, %c0_6] : memref<32x256xbf16, #tpu.memory_space<vmem>>, vector<32x256xbf16>
    %cst = arith.constant dense<0.000000e+00> : vector<8x256xf32>
    %9 = tpu.matmul %6, %8, %cst {dimension_numbers = #tpu.dot_dimension_numbers<[1], [0], [0], [1], [0, 0, 1, 1], [], []>} : vector<8x32xbf16>, vector<32x256xbf16>, vector<8x256xf32> -> vector<8x256xf32>
    %c0_7 = arith.constant 0 : index
    %c0_8 = arith.constant 0 : index
    %10 = vector.load %arg5[%c0_7, %c0_8] : memref<32x256xbf16, #tpu.memory_space<vmem>>, vector<32x256xbf16>
    %cst_9 = arith.constant dense<0.000000e+00> : vector<8x256xf32>
    %11 = tpu.matmul %7, %10, %cst_9 {dimension_numbers = #tpu.dot_dimension_numbers<[1], [0], [0], [1], [0, 0, 1, 1], [], []>} : vector<8x32xbf16>, vector<32x256xbf16>, vector<8x256xf32> -> vector<8x256xf32>
    %12 = arith.addf %9, %11 : vector<8x256xf32>
    %c0_10 = arith.constant 0 : index
    %c0_11 = arith.constant 0 : index
    %13 = vector.load %arg6[%c0_10, %c0_11] : memref<1x256xf32, #tpu.memory_space<vmem>>, vector<1x256xf32>
    %14 = vector.broadcast %13 : vector<1x256xf32> to vector<8x256xf32>
    %15 = arith.addf %12, %14 : vector<8x256xf32>
    %cst_12 = arith.constant 0.000000e+00 : f32
    %16 = vector.broadcast %cst_12 : f32 to vector<8x256xf32>
    %17 = arith.maximumf %15, %16 : vector<8x256xf32>
    %18 = arith.truncf %17 : vector<8x256xf32> to vector<8x256xbf16>
    %c0_13 = arith.constant 0 : index
    %c0_14 = arith.constant 0 : index
    %19 = vector.load %arg7[%c0_13, %c0_14] : memref<256x128xbf16, #tpu.memory_space<vmem>>, vector<256x128xbf16>
    %cst_15 = arith.constant dense<0.000000e+00> : vector<8x128xf32>
    %20 = tpu.matmul %18, %19, %cst_15 {dimension_numbers = #tpu.dot_dimension_numbers<[1], [0], [0], [1], [0, 0, 1, 1], [], []>} : vector<8x256xbf16>, vector<256x128xbf16>, vector<8x128xf32> -> vector<8x128xf32>
    %c0_16 = arith.constant 0 : index
    %c0_17 = arith.constant 0 : index
    %21 = vector.load %arg8[%c0_16, %c0_17] : memref<1x128xf32, #tpu.memory_space<vmem>>, vector<1x128xf32>
    %22 = vector.broadcast %21 : vector<1x128xf32> to vector<8x128xf32>
    %23 = arith.addf %20, %22 : vector<8x128xf32>
    %cst_18 = arith.constant 0.000000e+00 : f32
    %24 = vector.broadcast %cst_18 : f32 to vector<8x128xf32>
    %25 = arith.maximumf %23, %24 : vector<8x128xf32>
    %26 = arith.truncf %25 : vector<8x128xf32> to vector<8x128xbf16>
    %c0_19 = arith.constant 0 : index
    %c0_20 = arith.constant 0 : index
    %27 = vector.load %arg9[%c0_19, %c0_20] : memref<128x128xbf16, #tpu.memory_space<vmem>>, vector<128x128xbf16>
    %cst_21 = arith.constant dense<0.000000e+00> : vector<8x128xf32>
    %28 = tpu.matmul %26, %27, %cst_21 {dimension_numbers = #tpu.dot_dimension_numbers<[1], [0], [0], [1], [0, 0, 1, 1], [], []>} : vector<8x128xbf16>, vector<128x128xbf16>, vector<8x128xf32> -> vector<8x128xf32>
    %c0_22 = arith.constant 0 : index
    %c0_23 = arith.constant 0 : index
    %29 = vector.load %arg10[%c0_22, %c0_23] : memref<1x128xf32, #tpu.memory_space<vmem>>, vector<1x128xf32>
    %30 = vector.broadcast %29 : vector<1x128xf32> to vector<8x128xf32>
    %31 = arith.addf %28, %30 : vector<8x128xf32>
    %c0_24 = arith.constant 0 : index
    %c0_25 = arith.constant 0 : index
    %32 = vector.load %arg11[%c0_24, %c0_25] : memref<8x128xf32, #tpu.memory_space<vmem>>, vector<8x128xf32>
    tpu.vector_store %arg11[%c0_24, %c0_25], %31 {strides = array<i32>} : memref<8x128xf32, #tpu.memory_space<vmem>>, vector<8x128xf32>,
    return
  }
  func.func @transform_0(%arg0: i32) -> (i32, i32) {
    %c0_i32 = arith.constant 0 : i32
    %c0_i32_0 = arith.constant 0 : i32
    return %arg0, %c0_i32 : i32, i32
  }
  func.func @transform_1(%arg0: i32) -> (i32, i32) {
    %c0_i32 = arith.constant 0 : i32
    %c0_i32_0 = arith.constant 0 : i32
    return %arg0, %c0_i32 : i32, i32
  }
  func.func @transform_2(%arg0: i32) -> (i32, i32) {
    %c0_i32 = arith.constant 0 : i32
    %c0_i32_0 = arith.constant 0 : i32
    return %arg0, %c0_i32 : i32, i32
  }
  func.func @transform_3(%arg0: i32) -> (i32, i32) {
    %c0_i32 = arith.constant 0 : i32
    %c0_i32_0 = arith.constant 0 : i32
    %c0_i32_1 = arith.constant 0 : i32
    return %c0_i32, %c0_i32_0 : i32, i32
  }
  func.func @transform_4(%arg0: i32) -> (i32, i32) {
    %c0_i32 = arith.constant 0 : i32
    %c0_i32_0 = arith.constant 0 : i32
    %c0_i32_1 = arith.constant 0 : i32
    return %c0_i32, %c0_i32_0 : i32, i32
  }
  func.func @transform_5(%arg0: i32) -> (i32, i32) {
    %c0_i32 = arith.constant 0 : i32
    %c0_i32_0 = arith.constant 0 : i32
    %c0_i32_1 = arith.constant 0 : i32
    return %c0_i32, %c0_i32_0 : i32, i32
  }
  func.func @transform_6(%arg0: i32) -> (i32, i32) {
    %c0_i32 = arith.constant 0 : i32
    %c0_i32_0 = arith.constant 0 : i32
    %c0_i32_1 = arith.constant 0 : i32
    return %c0_i32, %c0_i32_0 : i32, i32
  }
  func.func @transform_7(%arg0: i32) -> (i32, i32) {
    %c0_i32 = arith.constant 0 : i32
    %c0_i32_0 = arith.constant 0 : i32
    %c0_i32_1 = arith.constant 0 : i32
    return %c0_i32, %c0_i32_0 : i32, i32
  }
  func.func @transform_8(%arg0: i32) -> (i32, i32) {
    %c0_i32 = arith.constant 0 : i32
    %c0_i32_0 = arith.constant 0 : i32
    %c0_i32_1 = arith.constant 0 : i32
    return %c0_i32, %c0_i32_0 : i32, i32
  }
  func.func @transform_9(%arg0: i32) -> (i32, i32) {
    %c0_i32 = arith.constant 0 : i32
    %c0_i32_0 = arith.constant 0 : i32
    %c0_i32_1 = arith.constant 0 : i32
    return %c0_i32, %c0_i32_0 : i32, i32
  }
  func.func @transform_10(%arg0: i32) -> (i32, i32) {
    %c0_i32 = arith.constant 0 : i32
    %c0_i32_0 = arith.constant 0 : i32
    return %arg0, %c0_i32 : i32, i32
  }
}

</mosaic_0001>

<bundles_post_ra>
// kernel: tpu_custom_call.1
= control target key start
LH: loop header
LB: loop body
LE: loop exit
PB: predicated region body
PF: predicated region fallthrough
CT: control target
= control target key end

     0   :  { %15 = vsyncpa [#allocation3], 0  ;;  %s1019_s0 = inlined_call_operand.hbm [shape: f32[8,32], index: 0, kind: input, shape index: {}]   ;;  %s1020_s1 = inlined_call_operand.hbm [shape: f32[8,32], index: 1, kind: input, shape index: {}]   ;;  %s1021_s2 = inlined_call_operand.hbm [shape: f32[8,32], index: 2, kind: input, shape index: {}]   ;;  %s1022_s3 = inlined_call_operand.hbm [shape: bf16[32,256], index: 3, kind: input, shape index: {}]   ;;  %s1023_s4 = inlined_call_operand.hbm [shape: bf16[32,256], index: 4, kind: input, shape index: {}]   ;;  %s1024_s5 = inlined_call_operand.vmem [shape: f32[1,256], index: 5, kind: input, shape index: {}]   ;;  %s1025_s6 = inlined_call_operand.hbm [shape: bf16[256,128], index: 6, kind: input, shape index: {}]   ;;  %s1026_s7 = inlined_call_operand.vmem [shape: f32[1,128], index: 7, kind: input, shape index: {}]   ;;  %s1027_s8 = inlined_call_operand.hbm [shape: bf16[128,128], index: 8, kind: input, shape index: {}]   ;;  %s1028_s9 = inlined_call_operand.vmem [shape: f32[1,128], index: 9, kind: input, shape index: {}]   ;;  %s1029_s10 = inlined_call_operand.hbm [shape: f32[8,128], index: 10, kind: output, shape index: {}]  }
   0x1   :  { %16 = vsyncpa [#allocation6], 0 }
   0x2   :  { %17 = vsyncpa [#allocation9], 0 }
   0x3   :  { %18 = vsyncpa [#allocation12], 0 }
   0x4   :  { %19 = vsyncpa [#allocation4], 0  ;;  %s904_s13 = smov [#allocation5]   ;;  %s905_s15 = smov [#allocation8]  }
   0x5   :  { %s36_s14 = sshll.u32 %s904_s13, 4  ;;  %s55_s16 = sshll.u32 %s905_s15, 4  ;;  %s37_s14 = int_to_ptr.vmem [resolvable:$true] %s36_s14  ;;  %s56_s16 = int_to_ptr.vmem [resolvable:$true] %s55_s16 }
   0x6   :  { %s742_s17 = scalar_lea.vmem %s37_s14, 128  ;;  %p747_p1 = scmp.lt.s32.totalorder %s37_s14, %s37_s14 }
   0x7   :  { %p743_p0 = scmp.ne.s32.totalorder %s37_s14, %s742_s17  ;;  %p748_p2 = scmp.lt.s32.totalorder %s742_s17, %s742_s17 }
   0x9   :  { %p749_p3 = por %p748_p2, %p747_p1 }
   0xb   :  { %p750_p4 = pnand %p749_p3, %p743_p0 }
   0xd   :  { %753 = shalt.err (!%p750_p4)
}
   0xe   :  { %39 = dma.hbm_to_vmem [thread:$0]  %s1020_s1, 128, %s37_s14, [#allocation6]  }
   0xf   :  { %s762_s20 = scalar_lea.vmem %s56_s16, 512  ;;  %p767_p6 = scmp.lt.s32.totalorder %s56_s16, %s56_s16 }
  0x10   :  { %p763_p5 = scmp.ne.s32.totalorder %s56_s16, %s762_s20  ;;  %p768_p7 = scmp.lt.s32.totalorder %s762_s20, %s762_s20 }
  0x12   :  { %p769_p8 = por %p768_p7, %p767_p6 }
  0x14   :  { %p770_p9 = pnand %p769_p8, %p763_p5 }
  0x16   :  { %773 = shalt.err (!%p770_p9)
}
  0x17   :  { %s906_s21 = smov 128   ;;  %s907_s22 = smov 8  }
  0x18   :  { %61 = dma.hbm_to_vmem [thread:$0]  %s1022_s3, 512, %s56_s16, [#allocation9], %s906_s21, %s906_s21, %s907_s22  }
  0x19   :  { %s908_s25 = smov [#allocation11]  }
  0x1a   :  { %s81_s26 = sshll.u32 %s908_s25, 4  ;;  %s82_s26 = int_to_ptr.vmem [resolvable:$true] %s81_s26 }
  0x1b   :  { %s782_s1 = scalar_lea.vmem %s82_s26, 2048  ;;  %p787_p11 = scmp.lt.s32.totalorder %s82_s26, %s82_s26 }
  0x1c   :  { %p783_p10 = scmp.ne.s32.totalorder %s82_s26, %s782_s1  ;;  %p788_p12 = scmp.lt.s32.totalorder %s782_s1, %s782_s1 }
  0x1e   :  { %p789_p13 = por %p788_p12, %p787_p11 }
  0x20   :  { %p790_p0 = pnand %p789_p13, %p783_p10 }
  0x22   :  { %793 = shalt.err (!%p790_p0)
}
  0x23   :  { %s909_s27 = smov 64   ;;  %s910_s28 = smov 4  }
  0x24   :  { %87 = dma.hbm_to_vmem [thread:$0]  %s1025_s6, 2048, %s82_s26, [#allocation12], %s909_s27, %s909_s27, %s910_s28  }
  0x25   :  { %s911_s3 = smov [#allocation2]   ;;  %s912_s12 = smov [#allocation7]  }
  0x26   :  { %s26_s11 = sshll.u32 %s911_s3, 4  ;;  %s46_s13 = sshll.u32 %s912_s12, 4  ;;  %s27_s11 = int_to_ptr.vmem [resolvable:$true] %s26_s11  ;;  %s47_s13 = int_to_ptr.vmem [resolvable:$true] %s46_s13 }
  0x27   :  { %s802_s14 = scalar_lea.vmem %s27_s11, 128  ;;  %p807_p2 = scmp.lt.s32.totalorder %s27_s11, %s27_s11 }
  0x28   :  { %p803_p1 = scmp.ne.s32.totalorder %s27_s11, %s802_s14  ;;  %p808_p3 = scmp.lt.s32.totalorder %s802_s14, %s802_s14 }
  0x2a   :  { %p809_p4 = por %p808_p3, %p807_p2 }
  0x2c   :  { %p810_p5 = pnand %p809_p4, %p803_p1 }
  0x2e   :  { %813 = shalt.err (!%p810_p5)
}
  0x2f   :  { %29 = dma.hbm_to_vmem [thread:$0]  %s1019_s0, 128, %s27_s11, [#allocation3]  }
  0x30   :  { %s822_s17 = scalar_lea.vmem %s47_s13, 128  ;;  %p827_p7 = scmp.lt.s32.totalorder %s47_s13, %s47_s13 }
  0x31   :  { %p823_p6 = scmp.ne.s32.totalorder %s47_s13, %s822_s17  ;;  %p828_p8 = scmp.lt.s32.totalorder %s822_s17, %s822_s17 }
  0x33   :  { %p829_p9 = por %p828_p8, %p827_p7 }
  0x35   :  { %p830_p10 = pnand %p829_p9, %p823_p6 }
  0x37   :  { %833 = shalt.err (!%p830_p10)
}
  0x38   :  { %49 = dma.hbm_to_vmem [thread:$0]  %s1021_s2, 128, %s47_s13, [#allocation6]  }
  0x39   :  { %s913_s19 = smov [#allocation10]   ;;  %s914_s23 = smov [#allocation13]  }
  0x3a   :  { %s67_s20 = sshll.u32 %s913_s19, 4  ;;  %s95_s24 = sshll.u32 %s914_s23, 4  ;;  %s68_s20 = int_to_ptr.vmem [resolvable:$true] %s67_s20  ;;  %s96_s24 = int_to_ptr.vmem [resolvable:$true] %s95_s24 }
  0x3b   :  { %s842_s25 = scalar_lea.vmem %s68_s20, 512  ;;  %p847_p12 = scmp.lt.s32.totalorder %s68_s20, %s68_s20 }
  0x3c   :  { %p843_p11 = scmp.ne.s32.totalorder %s68_s20, %s842_s25  ;;  %p848_p13 = scmp.lt.s32.totalorder %s842_s25, %s842_s25 }
  0x3e   :  { %p849_p0 = por %p848_p13, %p847_p12 }
  0x40   :  { %p850_p1 = pnand %p849_p0, %p843_p11 }
  0x42   :  { %853 = shalt.err (!%p850_p1)
}
  0x43   :  { %73 = dma.hbm_to_vmem [thread:$0]  %s1023_s4, 512, %s68_s20, [#allocation9], %s906_s21, %s906_s21, %s907_s22  }
  0x44   :  { %s862_s2 = scalar_lea.vmem %s96_s24, 1024  ;;  %p867_p3 = scmp.lt.s32.totalorder %s96_s24, %s96_s24 }
  0x45   :  { %p863_p2 = scmp.ne.s32.totalorder %s96_s24, %s862_s2  ;;  %p868_p4 = scmp.lt.s32.totalorder %s862_s2, %s862_s2 }
  0x47   :  { %p869_p5 = por %p868_p4, %p867_p3 }
  0x49   :  { %p870_p6 = pnand %p869_p5, %p863_p2 }
  0x4b   :  { %873 = shalt.err (!%p870_p6)
}
  0x4c   :  { %101 = dma.hbm_to_vmem [thread:$0]  %s1027_s8, 1024, %s96_s24, [#allocation12], %s909_s27, %s909_s27, %s910_s28  }
  0x4d   :  { %894 = dma.done.wait [#allocation3], 128  }
  0x4e   :  { %895 = vsyncadd [#allocation3], 4294967168 }
  0x4f   :  { %896 = dma.done.wait [#allocation6], 256  }
  0x50   :  { %897 = vsyncadd [#allocation6], 4294967040 }
  0x51   :  { %898 = dma.done.wait [#allocation9], 1024  }
  0x52   :  { %899 = vsyncadd [#allocation9], 4294966272 }
  0x53   :  { %900 = dma.done.wait [#allocation12], 3072  }
  0x54   :  { %901 = vsyncadd [#allocation12], 4294964224  ;;  %v915_v0 = vmov 0   ;;  %v698_v1 = vld [vmem:[#allocation10 + $0x14] ss:$8 sps:$4 sm:$0xff]   ;;  %v126_v10 = vld [vmem:[#allocation2] sm:$0xff]  ;;  %v273_v39 = vlaneseq }
  0x55   :  { %198 = vmatprep.mubr.bf16.mxu0 %v915_v0  ;;  %262 = vmatprep.mubr.bf16.mxu1 %v915_v0  ;;  %v700_v2 = vld [vmem:[#allocation8 + $0x14] ss:$8 sps:$4 sm:$0xff]   ;;  %v702_v3 = vld [vmem:[#allocation10 + $0x10] ss:$8 sps:$4 sm:$0xff]   ;;  %v704_v5 = vld [vmem:[#allocation10 + $0x4] ss:$8 sps:$4 sm:$0xff]  }
  0x56   :  { %178 = vmatprep.subr.bf16.mxu0 %v698_v1  ;;  %v703_v4 = vld [vmem:[#allocation8 + $0x10] ss:$8 sps:$4 sm:$0xff]   ;;  %242 = vmatprep.subr.bf16.mxu1 %v700_v2  ;;  %v706_v6 = vld [vmem:[#allocation8 + $0x4] ss:$8 sps:$4 sm:$0xff]   ;;  %v708_v7 = vld [vmem:[#allocation10] ss:$8 sps:$4 sm:$0xff]  }
  0x57   :  { %179 = vmatpush1.bf16.msra.mxu0 %v702_v3  ;;  %243 = vmatpush1.bf16.msra.mxu1 %v703_v4  ;;  %v709_v8 = vld [vmem:[#allocation8] ss:$8 sps:$4 sm:$0xff]   ;;  %v127_v9 = vld [vmem:[#allocation5] sm:$0xff]  ;;  %v128_v11 = vld [vmem:[#allocation7] sm:$0xff]  ;;  %vm162_vm0 = vcmask 261120   ;;  %v916_v34 = vmov 0.0  }
  0x58   :  { %180 = vmatprep.subr.bf16.mxu0 %v704_v5  ;;  %244 = vmatprep.subr.bf16.mxu1 %v706_v6  ;;  %v129_v12 = vsub.f32 %v126_v10, %v127_v9  ;;  %v133_v13 = vpack.c.bf16 %v127_v9, %v127_v9  ;;  %v710_v14 = vld [vmem:[#allocation11 + $0x78] sm:$0xff]   ;;  %v712_v17 = vld [vmem:[#allocation11 + $0x70] sm:$0xff]   ;;  %v714_v21 = vld [vmem:[#allocation11 + $0x68] sm:$0xff]   ;;  %v274_v40 = vshrl.u32 %v273_v39, 7  ;;  %vm917_vm1 = vmmov 0   ;;  %s918_s28 = smov [#allocation14]  }
  0x59   :  { %v711_v16 = vld [vmem:[#allocation11 + $0x38] sm:$0xff]   ;;  %v713_v20 = vld [vmem:[#allocation11 + $0x30] sm:$0xff]   ;;  %v715_v22 = vld [vmem:[#allocation11 + $0x28] sm:$0xff]   ;;  %s584_s30 = sshll.u32 %s918_s28, 4  ;;  %s585_s30 = int_to_ptr.vmem [resolvable:$true] %s584_s30 }
  0x5a   :  { %v130_v15 = vmul.f32 %v129_v12, %v128_v11  ;;  %v716_v23 = vld [vmem:[#allocation11 + $0x60] sm:$0xff]   ;;  %v718_v25 = vld [vmem:[#allocation11 + $0x58] sm:$0xff]   ;;  %v720_v27 = vld [vmem:[#allocation11 + $0x50] sm:$0xff]   ;;  %v275_v41 = vsub.s32 0, %v274_v40  ;;  %v279_v44 = vsub.s32 1, %v274_v40  ;;  %p879_p8 = scmp.lt.s32.totalorder %s585_s30, %s585_s30 }
  0x5b   :  { %181 = vmatpush1.bf16.msra.mxu0 %v708_v7  ;;  %245 = vmatpush1.bf16.msra.mxu1 %v709_v8  ;;  %v717_v24 = vld [vmem:[#allocation11 + $0x20] sm:$0xff]   ;;  %v719_v26 = vld [vmem:[#allocation11 + $0x18] sm:$0xff]   ;;  %v721_v28 = vld [vmem:[#allocation11 + $0x10] sm:$0xff]  }
  0x5c   :  { %632 = vmatprep.subr.bf16.mxu0 %v710_v14  ;;  %v131_v18 = vadd.f32 %v130_v15, %v127_v9  ;;  %v722_v29 = vld [vmem:[#allocation11 + $0x48] sm:$0xff]   ;;  %v724_v31 = vld [vmem:[#allocation11 + $0x40] sm:$0xff]   ;;  %v726_v33 = vld [vmem:[#allocation13 + $0x38] sm:$0xff]   ;;  %663 = vmatprep.subr.bf16.mxu1 %v916_v34 }
  0x5d   :  { %v723_v30 = vld [vmem:[#allocation11 + $0x8] sm:$0xff]   ;;  %v725_v32 = vld [vmem:[#allocation11] sm:$0xff]   ;;  %v727_v35 = vld [vmem:[#allocation13 + $0x30] sm:$0xff]  }
  0x5e   :  { %600 = vmatmul.mubr.msk.bf16.vlgmr.msra.gmra.mxu0 %vm162_vm0, %v133_v13  ;;  %v132_v19 = vpack.c.bf16 %v131_v18, %v131_v18  ;;  %v728_v36 = vld [vmem:[#allocation13 + $0x28] sm:$0xff]   ;;  %v729_v37 = vld [vmem:[#allocation13 + $0x20] sm:$0xff]   ;;  %v730_v38 = vld [vmem:[#allocation13 + $0x18] sm:$0xff]  }
  0x5f   :  { %633 = vmatpush3.bf16.msra.mxu0 %v711_v16  ;;  %v271_v42 = vld [vmem:[%s1024_s5] sm:$0x3]  ;;  %v731_v62 = vld [vmem:[#allocation13 + $0x10] sm:$0xff]   ;;  %v733_v0 = vld [vmem:[#allocation13] sm:$0xff]  }
  0x60   :  { %634 = vmatprep.subr.bf16.mxu0 %v712_v17  ;;  %605 = vmatmul.mubr.msk.bf16.vlgmr.msra.gmra.mxu1 %vm162_vm0, %v132_v19  ;;  %v276_v45 = vrot.slane %v271_v42, %v275_v41  ;;  %v280_v49 = vrot.slane %v271_v42, %v279_v44  ;;  %v732_v63 = vld [vmem:[#allocation13 + $0x8] sm:$0xff]  }
  0x61   :  { %664 = vmatpush3.bf16.msra.mxu1 %v726_v33  ;;  %679 = vmatprep.mubr.msk.bf16.mxu1 %vm917_vm1, %v916_v34  ;;  %v606_v2 = vld [vmem:[%s1026_s7] ss:$0 sm:$0xff]  ;;  %s874_s7 = scalar_lea.vmem %s585_s30, 128 }
  0x62   :  { %665 = vmatprep.subr.bf16.mxu1 %v916_v34  ;;  %v623_v10 = vld [vmem:[%s1028_s9] ss:$0 sm:$0xff]  ;;  %p875_p7 = scmp.ne.s32.totalorder %s585_s30, %s874_s7  ;;  %p880_p9 = scmp.lt.s32.totalorder %s874_s7, %s874_s7 }
  0x63   :  { %635 = vmatpush3.bf16.msra.mxu0 %v713_v20 }
  0x64   :  { %636 = vmatprep.subr.bf16.mxu0 %v714_v21  ;;  %p881_p10 = por %p880_p9, %p879_p8 }
  0x65   :  { %666 = vmatpush3.bf16.msra.mxu1 %v727_v35 }
  0x66   :  { %667 = vmatprep.subr.bf16.mxu1 %v916_v34  ;;  %p882_p11 = pnand %p881_p10, %p875_p7 }
  0x67   :  { %637 = vmatpush3.bf16.msra.mxu0 %v715_v22 }
  0x68   :  { %638 = vmatprep.subr.bf16.mxu0 %v716_v23 }
  0x69   :  { %668 = vmatpush3.bf16.msra.mxu1 %v728_v36 }
  0x6a   :  { %669 = vmatprep.subr.bf16.mxu1 %v916_v34 }
  0x6b   :  { %639 = vmatpush3.bf16.msra.mxu0 %v717_v24 }
  0x6c   :  { %640 = vmatprep.subr.bf16.mxu0 %v718_v25 }
  0x6d   :  { %670 = vmatpush3.bf16.msra.mxu1 %v729_v37 }
  0x6e   :  { %671 = vmatprep.subr.bf16.mxu1 %v916_v34 }
  0x6f   :  { %641 = vmatpush3.bf16.msra.mxu0 %v719_v26 }
  0x70   :  { %642 = vmatprep.subr.bf16.mxu0 %v720_v27 }
  0x71   :  { %672 = vmatpush3.bf16.msra.mxu1 %v730_v38 }
  0x72   :  { %673 = vmatprep.subr.bf16.mxu1 %v916_v34 }
  0x73   :  { %643 = vmatpush3.bf16.msra.mxu0 %v721_v28 }
  0x74   :  { %644 = vmatprep.subr.bf16.mxu0 %v722_v29 }
  0x75   :  { %674 = vmatpush3.bf16.msra.mxu1 %v731_v62 }
  0x76   :  { %675 = vmatprep.subr.bf16.mxu1 %v916_v34 }
  0x77   :  { %645 = vmatpush3.bf16.msra.mxu0 %v723_v30 }
  0x78   :  { %646 = vmatprep.subr.bf16.mxu0 %v724_v31 }
  0x79   :  { %676 = vmatpush3.bf16.msra.mxu1 %v732_v63 }
  0x7a   :  { %677 = vmatprep.subr.bf16.mxu1 %v916_v34 }
  0x7b   :  { %647 = vmatpush3.bf16.msra.mxu0 %v725_v32 }
  0x7d   :  { %678 = vmatpush3.bf16.msra.mxu1 %v733_v0 }
 0x11e   :  { %v200_v43 = vpop.f32.mrf.mxu0 }
 0x120   :  { %v202_v46 = vpop.f32.mrf.mxu0  ;;  %v264_v47 = vpop.f32.mrf.mxu1 }
 0x121   :  { %v265_v48 = vadd.f32 %v264_v47, %v200_v43 }
 0x122   :  { %v204_v50 = vpop.f32.mrf.mxu0  ;;  %v266_v51 = vpop.f32.mrf.mxu1 }
 0x123   :  { %v283_v52 = vadd.f32 %v276_v45, %v265_v48  ;;  %v267_v53 = vadd.f32 %v266_v51, %v202_v46 }
 0x124   :  { %v205_v54 = vpop.f32.mrf.mxu0  ;;  %v268_v55 = vpop.f32.mrf.mxu1 }
 0x125   :  { %v284_v56 = vadd.f32 %v280_v49, %v267_v53  ;;  %v285_v57 = vmax.f32 %v283_v52, 0.0 }
 0x126   :  { %v269_v58 = vpop.f32.mrf.mxu1 }
 0x127   :  { %v286_v59 = vmax.f32 %v284_v56, 0.0  ;;  %v287_v61 = vpack.c.bf16 %v285_v57, %v285_v57 }
 0x129   :  { %v288_v60 = vpack.c.bf16 %v286_v59, %v286_v59 }
 0x12b   :  { %456 = vmatprep.mubr.bf16.mxu0 %v288_v60 }
 0x12c   :  { %457 = vmatmul.mubr.bf16.vlgmr.msra.gmra.mxu0 %v287_v61 }
 0x1ec   :  { %v648_v1 = vpop.f32.mrf.mxu0 }
 0x1ee   :  { %v649_v3 = vpop.f32.mrf.mxu0 }
 0x1ef   :  { %v650_v4 = vadd.f32 %v649_v3, %v648_v1 }
 0x1f0   :  { %v651_v5 = vpop.f32.mrf.mxu0 }
 0x1f1   :  { %v459_v6 = vadd.f32 %v650_v4, %v606_v2 }
 0x1f2   :  { %v652_v7 = vpop.f32.mrf.mxu0 }
 0x1f3   :  { %v464_v8 = vmax.f32 %v459_v6, 0.0 }
 0x1f5   :  { %v465_v9 = vpack.c.bf16 %v464_v8, %v464_v8 }
 0x1f7   :  { %680 = vmatmul.mubr.bf16.vlgmr.msra.gmra.mxu1 %v465_v9 }
 0x2b7   :  { %v571_v11 = vpop.f32.mrf.mxu1 }
 0x2b8   :  { %v572_v12 = vadd.f32 %v623_v10, %v571_v11 }
 0x2b9   :  { %v681_v13 = vpop.f32.mrf.mxu1 }
 0x2ba   :  { %577 = vst [vmem:[#allocation14] sm:$0xff] %v572_v12 }
 0x2bb   :  { %v574_v14 = vpop.f32.mrf.mxu1 }
 0x2bc   :  { %885 = shalt.err (!%p882_p11)
}
 0x2bd   :  { %587 = dma.vmem_to_hbm [thread:$0]  %s585_s30, 128, %s1029_s10, [#allocation4]   ;;  %v682_v15 = vpop.f32.mrf.mxu1 }
 0x2be   :  { %902 = dma.done.wait [#allocation4], 128  }
 0x2bf   :  { %903 = vsyncadd [#allocation4], 4294967168 }
 0x2c0   :  { %591 = vsyncpa [#allocation3], 1 }
 0x2c1   :  { %592 = vsyncpa [#allocation6], 1 }
 0x2c2   :  { %593 = vsyncpa [#allocation9], 1 }
 0x2c3   :  { %594 = vsyncpa [#allocation12], 1 }
 0x2c4   :  { %595 = vsyncpa [#allocation4], 1 }

</bundles_post_ra>
